<compile_context>
chip_gen: v5e
topology: v5e:2x2
jax: 0.10.0
libtpu: 0.0.40
codegen_flags: <defaults>
</compile_context>

<pallas_src>
import functools

import jax
import jax.numpy as jnp
from jax.experimental import pallas as pl
from jax.experimental.pallas import tpu as pltpu

_TILE_ROWS = 2048     # rows of (B*T) per grid step; multiple of 256
_OUT_LANES = 128      # lane-dense padded width of the post_net output


def _round_up(n, m):
    return (n + m - 1) // m * m


def _num_tensorcores():
    """2 on chips whose TensorCores are exposed as one (mega)core device."""
    try:
        kind = jax.devices()[0].device_kind.lower()
    except Exception:
        return 1
    if any(tag in kind for tag in ("v4", "v5p", "v7", "7x")):
        return 2
    return 1


def _pool_kernel(x_ref, w1_ref, b1_ref, acc_ref, cnt_ref, *,
                 seq_len, total_rows, needs_row_mask):
    """Per-tile: pre_net + ReLU + padding mask + per-batch partial pooling."""
    c = pl.program_id(0)                 # core slice ("parallel")
    i = pl.program_id(1)                 # tile within core ("arbitrary")
    tiles_per_core = pl.num_programs(1)
    tile_rows = x_ref.shape[0]
    n_batch = acc_ref.shape[0]           # acc block is (B, H) (NC squeezed)

    @pl.when(i == 0)
    def _():
        acc_ref[...] = jnp.zeros_like(acc_ref)
        cnt_ref[...] = jnp.zeros_like(cnt_ref)

    t = c * tiles_per_core + i           # global (unclamped) tile index
    row0 = t * tile_rows

    x = x_ref[...]                                               # (TM, D) bf16
    if needs_row_mask:
        # Zero rows past the real (B*T) extent so garbage from partial /
        # clamped tiles never reaches the matmuls (0 * NaN would poison acc).
        rid = row0 + jax.lax.broadcasted_iota(jnp.int32, (tile_rows, 1), 0)
        x = jnp.where(rid < total_rows, x, jnp.zeros((), x.dtype))

    # valid = 1 - padding_mask: a row is valid iff any feature is nonzero.
    # |x| >= 0, so the bf16 sum is zero iff the row is all-zero.
    # TODO(synk): on v7x, if the vector-extended slot ever binds after the
    # memory-side fixes, move this cross-lane reduce onto the MXU (|x| @ ones).
    valid = jnp.sum(jnp.abs(x), axis=-1, keepdims=True) != 0     # (TM, 1) bool
    valid_f = valid.astype(jnp.float32)

    # pre_net + ReLU (bf16 MXU operands, f32 accumulation); padded rows -> 0.
    h = jnp.dot(x, w1_ref[...], preferred_element_type=jnp.float32)
    h = jnp.maximum(h + b1_ref[...], 0.0) * valid_f              # (TM, H) f32

    # One-hot batch-membership matrix: seg[b, r] = 1 iff global row
    # (row0 + r) belongs to batch b.  Tail / over-provisioned rows match no
    # batch and therefore contribute nothing.
    col = row0 + jax.lax.broadcasted_iota(jnp.int32, (n_batch, tile_rows), 1)
    lo = jax.lax.broadcasted_iota(jnp.int32, (n_batch, tile_rows), 0) * seq_len
    seg = jnp.logical_and(col >= lo, col < lo + seq_len).astype(jnp.bfloat16)

    # Per-batch partial sums + valid-token counts (MXU, bf16 ops / f32 acc).
    acc_ref[...] += jnp.dot(seg, h.astype(jnp.bfloat16),
                            preferred_element_type=jnp.float32)
    cnt_ref[...] += jnp.dot(seg, valid.astype(jnp.bfloat16),
                            preferred_element_type=jnp.float32)


def _finalize_kernel(acc_ref, cnt_ref, w2_ref, b2_ref, out_ref):
    """Combine per-core partials, normalize, apply post_net (tiny)."""
    acc = jnp.sum(acc_ref[...], axis=0)          # (B, H) f32
    cnt = jnp.sum(cnt_ref[...], axis=0)          # (B, 1) f32
    # cnt == 0 (fully padded sequence) -> inf/nan, matching the reference.
    pooled = acc / cnt
    out_ref[...] = (jnp.dot(pooled, w2_ref[...],
                            preferred_element_type=jnp.float32)
                    + b2_ref[...])


def emotion2vec_forward(x, w1, b1, w2, b2, *, tile_rows=_TILE_ROWS):
    """x: (B, T, D); w1: (D, H); b1: (H,); w2: (H, O); b2: (O,).

    Returns {'logits': (B, O) float32}.

    NOTE: x is consumed in bf16 (rows whose only nonzero entries underflow
    bf16 would be misclassified as padding — negligible for embeddings).
    """
    B, T, D = x.shape
    H = w1.shape[1]
    O = w2.shape[1]
    OP = _OUT_LANES
    assert O <= OP

    rows = B * T
    if rows <= tile_rows:
        tm = rows                              # full-extent block: always legal
    else:
        tm = _round_up(tile_rows, 256)         # MXU-friendly row tile
    num_tiles = pl.cdiv(rows, tm)

    nc = max(1, min(_num_tensorcores(), num_tiles))
    tiles_per_core = pl.cdiv(num_tiles, nc)
    tiles_total = nc * tiles_per_core
    needs_row_mask = (tiles_total * tm) != rows

    # bf16 input halves the dominant HBM stream.  Ideally this cast is fused
    # into the producer of x (or x already arrives as bf16); a standalone
    # cast here costs one extra HBM pass over x.
    if x.dtype != jnp.bfloat16:
        x = x.astype(jnp.bfloat16)
    x2d = x.reshape(rows, D)

    w1_bf = jnp.asarray(w1, jnp.bfloat16)                      # (D, H)
    b1_f = jnp.asarray(b1, jnp.float32).reshape(1, H)
    w2_p = jnp.pad(jnp.asarray(w2, jnp.float32), ((0, 0), (0, OP - O)))
    b2_p = jnp.pad(jnp.asarray(b2, jnp.float32).reshape(1, O),
                   ((0, 0), (0, OP - O)))

    def x_index_map(c, i):
        # Clamp over-provisioned tiles (nc * tiles_per_core > num_tiles) onto
        # the last real tile; their rows are masked out inside the kernel.
        return (jnp.minimum(c * tiles_per_core + i, num_tiles - 1), 0)

    kernel = functools.partial(
        _pool_kernel, seq_len=T, total_rows=rows,
        needs_row_mask=needs_row_mask)

    covered = tiles_total * tm
    flops = int(2 * covered * D * H                 # pre_net
                + 2 * covered * B * (H + 1))        # segment pooling
    bytes_accessed = int(rows * D * 2               # x (bf16)
                         + D * H * 2 + H * 4        # W1 (bf16) + b1
                         + nc * B * (H + 1) * 4)    # partial outputs

    acc_parts, cnt_parts = pl.pallas_call(
        kernel,
        out_shape=(jax.ShapeDtypeStruct((nc, B, H), jnp.float32),
                   jax.ShapeDtypeStruct((nc, B, 1), jnp.float32)),
        grid_spec=pltpu.PrefetchScalarGridSpec(
            num_scalar_prefetch=0,
            grid=(nc, tiles_per_core),
            in_specs=[
                pl.BlockSpec((tm, D), x_index_map),            # x tile (pipelined)
                pl.BlockSpec((D, H), lambda c, i: (0, 0)),     # W1 (resident)
                pl.BlockSpec((1, H), lambda c, i: (0, 0)),     # b1
            ],
            out_specs=[
                pl.BlockSpec((None, B, H), lambda c, i: (c, 0, 0)),
                pl.BlockSpec((None, B, 1), lambda c, i: (c, 0, 0)),
            ],
        ),
        compiler_params=pltpu.CompilerParams(
            dimension_semantics=("parallel", "arbitrary"),
            vmem_limit_bytes=32 * 1024 * 1024),
        cost_estimate=pl.CostEstimate(
            flops=flops, transcendentals=0, bytes_accessed=bytes_accessed),
    )(x2d, w1_bf, b1_f)

    # Tiny finalize (partials combine + reciprocal + post_net); whole-array
    # blocks, single invocation, lane-dense (OP = 128) output store.
    logits_p = pl.pallas_call(
        _finalize_kernel,
        out_shape=jax.ShapeDtypeStruct((B, OP), jnp.float32),
    )(acc_parts, cnt_parts, w2_p, b2_p)

    return {"logits": logits_p[:, :O]}


def reference_forward(x, w1, b1, w2, b2):
    """Pure-JAX f32 reference mirroring the PyTorch module."""
    x = x.astype(jnp.float32)
    padding = (jnp.abs(x).sum(-1) == 0).astype(jnp.float32)     # (B, T)
    h = jax.nn.relu(jnp.einsum("btd,dh->bth", x, w1)
                    + jnp.reshape(b1, (1, 1, -1)))
    h = h * (1.0 - padding)[..., None]
    pooled = h.sum(axis=1) / (1.0 - padding).sum(axis=1, keepdims=True)
    return pooled @ w2 + jnp.reshape(b2, (1, -1))


if __name__ == "__main__":
    D, H, O = 768, 256, 8
    key = jax.random.PRNGKey(0)
    kp, kx1, kx2, kx3 = jax.random.split(key, 4)

    kw1, kb1, kw2, kb2 = jax.random.split(kp, 4)
    w1 = jax.random.normal(kw1, (D, H), jnp.float32) / jnp.sqrt(D)
    b1 = jax.random.normal(kb1, (H,), jnp.float32) * 0.01
    w2 = jax.random.normal(kw2, (H, O), jnp.float32) / jnp.sqrt(H)
    b2 = jax.random.normal(kb2, (O,), jnp.float32) * 0.01

    cases = []
    # 1) module defaults: batch=2, seq=8; last two steps of batch 1 padded.
    x = jax.random.normal(kx1, (2, 8, D), jnp.float32)
    x = x.at[1, 6:, :].set(0.0)
    cases.append((x, _TILE_ROWS))
    # 2) odd row count (21 rows) -> exercises padding + uneven shapes.
    x = jax.random.normal(kx2, (3, 7, D), jnp.float32)
    x = x.at[0, 5:, :].set(0.0)
    x = x.at[2, 1:, :].set(0.0)
    cases.append((x, _TILE_ROWS))
    # 3) multi-tile (+ dual-core split on 2-TC chips) via a small tile size;
    #    exercises the in-kernel tail-row masking and tile clamping.
    x = jax.random.normal(kx3, (4, 130, D), jnp.float32)
    x = x.at[3, 100:, :].set(0.0)
    cases.append((x, 256))

    for x, tr in cases:
        out = emotion2vec_forward(x, w1, b1, w2, b2, tile_rows=tr)
        logits = jax.block_until_ready(out["logits"])
        ref = reference_forward(x, w1, b1, w2, b2)
        assert logits.shape == ref.shape
        err = float(jnp.max(jnp.abs(logits - ref)))
        # bf16 MXU operands (f32 accumulation) vs f32 reference.
        assert jnp.allclose(logits, ref, atol=4e-2, rtol=4e-2), (
            f"shape={x.shape} max abs err {err}")

    print("KERNEL_OK")
</pallas_src>

<mosaic_0001>
module attributes {stable_mosaic.version = 11 : i64} {
  func.func @_pool_kernel(%arg0: i32, %arg1: i32, %arg2: memref<16x768xbf16, #tpu.memory_space<vmem>>, %arg3: memref<768x256xbf16, #tpu.memory_space<vmem>>, %arg4: memref<1x256xf32, #tpu.memory_space<vmem>>, %arg5: memref<1x2x256xf32, #tpu.memory_space<vmem>>, %arg6: memref<1x2x1xf32, #tpu.memory_space<vmem>>) attributes {dimension_semantics = [#tpu.dimension_semantics<parallel>, #tpu.dimension_semantics<arbitrary>], iteration_bounds = array<i64: 1, 1>, scalar_prefetch = 0 : i64, scratch_operands = 0 : i64, tpu.core_type = #tpu.core_type<tc>, window_params = [{transform_indices = @transform_0, window_bounds = array<i64: 16, 768>}, {pipeline_mode = #tpu.pipeline_mode<synchronous>, transform_indices = @transform_1, window_bounds = array<i64: 768, 256>}, {pipeline_mode = #tpu.pipeline_mode<synchronous>, transform_indices = @transform_2, window_bounds = array<i64: 1, 256>}, {transform_indices = @transform_3, window_bounds = array<i64: 1, 2, 256>}, {transform_indices = @transform_4, window_bounds = array<i64: 1, 2, 1>}]} {
    %c0_i32 = arith.constant 0 : i32
    %0 = arith.cmpi eq, %arg1, %c0_i32 : i32
    %1 = arith.extui %0 : i1 to i32
    %c0_i32_0 = arith.constant 0 : i32
    %2 = arith.cmpi ne, %1, %c0_i32_0 : i32
    scf.if %2 {
      %cst_24 = arith.constant 0.000000e+00 : f32
      %57 = vector.broadcast %cst_24 : f32 to vector<2x256xf32>
      %c0_25 = arith.constant 0 : index
      %c0_26 = arith.constant 0 : index
      %c0_27 = arith.constant 0 : index
      %58 = vector.load %arg5[%c0_25, %c0_26, %c0_27] : memref<1x2x256xf32, #tpu.memory_space<vmem>>, vector<1x2x256xf32>
      %59 = vector.shape_cast %58 : vector<1x2x256xf32> to vector<2x256xf32>
      %60 = vector.shape_cast %57 : vector<2x256xf32> to vector<1x2x256xf32>
      tpu.vector_store %arg5[%c0_25, %c0_26, %c0_27], %60 {strides = array<i32>} : memref<1x2x256xf32, #tpu.memory_space<vmem>>, vector<1x2x256xf32>,
      %cst_28 = arith.constant 0.000000e+00 : f32
      %61 = vector.broadcast %cst_28 : f32 to vector<2x1xf32>
      %c0_29 = arith.constant 0 : index
      %c0_30 = arith.constant 0 : index
      %c0_31 = arith.constant 0 : index
      %62 = vector.load %arg6[%c0_29, %c0_30, %c0_31] : memref<1x2x1xf32, #tpu.memory_space<vmem>>, vector<1x2x1xf32>
      %63 = vector.shape_cast %62 : vector<1x2x1xf32> to vector<2x1xf32>
      %64 = vector.shape_cast %61 : vector<2x1xf32> to vector<1x2x1xf32>
      tpu.vector_store %arg6[%c0_29, %c0_30, %c0_31], %64 {strides = array<i32>} : memref<1x2x1xf32, #tpu.memory_space<vmem>>, vector<1x2x1xf32>,
    } else {
    }
    %c1_i32 = arith.constant 1 : i32
    %3 = arith.muli %arg0, %c1_i32 : i32
    %4 = arith.addi %3, %arg1 : i32
    %c16_i32 = arith.constant 16 : i32
    %5 = arith.muli %4, %c16_i32 : i32
    %c0 = arith.constant 0 : index
    %c0_1 = arith.constant 0 : index
    %6 = vector.load %arg2[%c0, %c0_1] : memref<16x768xbf16, #tpu.memory_space<vmem>>, vector<16x768xbf16>
    %7 = math.absf %6 : vector<16x768xbf16>
    %8 = arith.extf %7 : vector<16x768xbf16> to vector<16x768xf32>
    %cst = arith.constant dense<0.000000e+00> : vector<16xf32>
    %9 = vector.multi_reduction <add>, %8, %cst [1] : vector<16x768xf32> to vector<16xf32>
    %10 = vector.shape_cast %9 : vector<16xf32> to vector<16x1xf32>
    %11 = arith.truncf %10 : vector<16x1xf32> to vector<16x1xbf16>
    %cst_2 = arith.constant 0.000000e+00 : bf16
    %12 = vector.broadcast %cst_2 : bf16 to vector<16x1xbf16>
    %13 = arith.cmpf one, %11, %12 : vector<16x1xbf16>
    %14 = arith.extui %13 : vector<16x1xi1> to vector<16x1xi32>
    %15 = arith.sitofp %14 : vector<16x1xi32> to vector<16x1xf32>
    %c0_3 = arith.constant 0 : index
    %c0_4 = arith.constant 0 : index
    %16 = vector.load %arg3[%c0_3, %c0_4] : memref<768x256xbf16, #tpu.memory_space<vmem>>, vector<768x256xbf16>
    %cst_5 = arith.constant dense<0.000000e+00> : vector<16x256xf32>
    %17 = tpu.matmul %6, %16, %cst_5 {dimension_numbers = #tpu.dot_dimension_numbers<[1], [0], [0], [1], [0, 0, 1, 1], [], []>} : vector<16x768xbf16>, vector<768x256xbf16>, vector<16x256xf32> -> vector<16x256xf32>
    %c0_6 = arith.constant 0 : index
    %c0_7 = arith.constant 0 : index
    %18 = vector.load %arg4[%c0_6, %c0_7] : memref<1x256xf32, #tpu.memory_space<vmem>>, vector<1x256xf32>
    %19 = vector.broadcast %18 : vector<1x256xf32> to vector<16x256xf32>
    %20 = arith.addf %17, %19 : vector<16x256xf32>
    %cst_8 = arith.constant 0.000000e+00 : f32
    %21 = vector.broadcast %cst_8 : f32 to vector<16x256xf32>
    %22 = arith.maximumf %20, %21 : vector<16x256xf32>
    %23 = vector.broadcast %15 : vector<16x1xf32> to vector<16x256xf32>
    %24 = arith.mulf %22, %23 : vector<16x256xf32>
    %25 = tpu.iota {dimensions = array<i32: 1>} : vector<2x16xi32>
    %26 = vector.broadcast %5 : i32 to vector<2x16xi32>
    %27 = arith.addi %26, %25 : vector<2x16xi32>
    %28 = tpu.iota {dimensions = array<i32: 0>} : vector<2x16xi32>
    %c8_i32 = arith.constant 8 : i32
    %29 = vector.broadcast %c8_i32 : i32 to vector<2x16xi32>
    %30 = arith.muli %28, %29 : vector<2x16xi32>
    %31 = arith.cmpi sge, %27, %30 : vector<2x16xi32>
    %c8_i32_9 = arith.constant 8 : i32
    %32 = vector.broadcast %c8_i32_9 : i32 to vector<2x16xi32>
    %33 = arith.addi %30, %32 : vector<2x16xi32>
    %34 = arith.cmpi slt, %27, %33 : vector<2x16xi32>
    %35 = arith.andi %31, %34 : vector<2x16xi1>
    %36 = arith.extui %35 : vector<2x16xi1> to vector<2x16xi32>
    %37 = arith.sitofp %36 : vector<2x16xi32> to vector<2x16xf32>
    %38 = arith.truncf %37 : vector<2x16xf32> to vector<2x16xbf16>
    %c0_10 = arith.constant 0 : index
    %c0_11 = arith.constant 0 : index
    %c0_12 = arith.constant 0 : index
    %39 = vector.load %arg5[%c0_10, %c0_11, %c0_12] : memref<1x2x256xf32, #tpu.memory_space<vmem>>, vector<1x2x256xf32>
    %40 = vector.shape_cast %39 : vector<1x2x256xf32> to vector<2x256xf32>
    %41 = arith.truncf %24 : vector<16x256xf32> to vector<16x256xbf16>
    %cst_13 = arith.constant dense<0.000000e+00> : vector<2x256xf32>
    %42 = tpu.matmul %38, %41, %cst_13 {dimension_numbers = #tpu.dot_dimension_numbers<[1], [0], [0], [1], [0, 0, 1, 1], [], []>} : vector<2x16xbf16>, vector<16x256xbf16>, vector<2x256xf32> -> vector<2x256xf32>
    %43 = arith.addf %40, %42 : vector<2x256xf32>
    %c0_14 = arith.constant 0 : index
    %c0_15 = arith.constant 0 : index
    %c0_16 = arith.constant 0 : index
    %44 = vector.load %arg5[%c0_14, %c0_15, %c0_16] : memref<1x2x256xf32, #tpu.memory_space<vmem>>, vector<1x2x256xf32>
    %45 = vector.shape_cast %44 : vector<1x2x256xf32> to vector<2x256xf32>
    %46 = vector.shape_cast %43 : vector<2x256xf32> to vector<1x2x256xf32>
    tpu.vector_store %arg5[%c0_14, %c0_15, %c0_16], %46 {strides = array<i32>} : memref<1x2x256xf32, #tpu.memory_space<vmem>>, vector<1x2x256xf32>,
    %c0_17 = arith.constant 0 : index
    %c0_18 = arith.constant 0 : index
    %c0_19 = arith.constant 0 : index
    %47 = vector.load %arg6[%c0_17, %c0_18, %c0_19] : memref<1x2x1xf32, #tpu.memory_space<vmem>>, vector<1x2x1xf32>
    %48 = vector.shape_cast %47 : vector<1x2x1xf32> to vector<2x1xf32>
    %49 = arith.extui %13 : vector<16x1xi1> to vector<16x1xi32>
    %50 = arith.sitofp %49 : vector<16x1xi32> to vector<16x1xf32>
    %51 = arith.truncf %50 : vector<16x1xf32> to vector<16x1xbf16>
    %cst_20 = arith.constant dense<0.000000e+00> : vector<2x1xf32>
    %52 = tpu.matmul %38, %51, %cst_20 {dimension_numbers = #tpu.dot_dimension_numbers<[1], [0], [0], [1], [0, 0, 1, 1], [], []>} : vector<2x16xbf16>, vector<16x1xbf16>, vector<2x1xf32> -> vector<2x1xf32>
    %53 = arith.addf %48, %52 : vector<2x1xf32>
    %c0_21 = arith.constant 0 : index
    %c0_22 = arith.constant 0 : index
    %c0_23 = arith.constant 0 : index
    %54 = vector.load %arg6[%c0_21, %c0_22, %c0_23] : memref<1x2x1xf32, #tpu.memory_space<vmem>>, vector<1x2x1xf32>
    %55 = vector.shape_cast %54 : vector<1x2x1xf32> to vector<2x1xf32>
    %56 = vector.shape_cast %53 : vector<2x1xf32> to vector<1x2x1xf32>
    tpu.vector_store %arg6[%c0_21, %c0_22, %c0_23], %56 {strides = array<i32>} : memref<1x2x1xf32, #tpu.memory_space<vmem>>, vector<1x2x1xf32>,
    return
  }
  func.func @transform_0(%arg0: i32, %arg1: i32) -> (i32, i32) {
    %c1_i32 = arith.constant 1 : i32
    %0 = arith.muli %arg0, %c1_i32 : i32
    %1 = arith.addi %0, %arg1 : i32
    %c0_i32 = arith.constant 0 : i32
    %2 = arith.minsi %1, %c0_i32 : i32
    %c0_i32_0 = arith.constant 0 : i32
    %c0_i32_1 = arith.constant 0 : i32
    return %2, %c0_i32_0 : i32, i32
  }
  func.func @transform_1(%arg0: i32, %arg1: i32) -> (i32, i32) {
    %c0_i32 = arith.constant 0 : i32
    %c0_i32_0 = arith.constant 0 : i32
    %c0_i32_1 = arith.constant 0 : i32
    return %c0_i32, %c0_i32_0 : i32, i32
  }
  func.func @transform_2(%arg0: i32, %arg1: i32) -> (i32, i32) {
    %c0_i32 = arith.constant 0 : i32
    %c0_i32_0 = arith.constant 0 : i32
    %c0_i32_1 = arith.constant 0 : i32
    return %c0_i32, %c0_i32_0 : i32, i32
  }
  func.func @transform_3(%arg0: i32, %arg1: i32) -> (i32, i32, i32) {
    %c0_i32 = arith.constant 0 : i32
    %c0_i32_0 = arith.constant 0 : i32
    %c0_i32_1 = arith.constant 0 : i32
    return %arg0, %c0_i32, %c0_i32_0 : i32, i32, i32
  }
  func.func @transform_4(%arg0: i32, %arg1: i32) -> (i32, i32, i32) {
    %c0_i32 = arith.constant 0 : i32
    %c0_i32_0 = arith.constant 0 : i32
    %c0_i32_1 = arith.constant 0 : i32
    return %arg0, %c0_i32, %c0_i32_0 : i32, i32, i32
  }
}

</mosaic_0001>

<bundles_post_ra>
// kernel: tpu_custom_call.1
= control target key start
LH: loop header
LB: loop body
LE: loop exit
PB: predicated region body
PF: predicated region fallthrough
CT: control target
= control target key end

     0   :  { %10 = vsyncpa [#allocation3], 0  ;;  %s1740_s0 = inlined_call_operand.hbm [shape: bf16[16,768], index: 0, kind: input, shape index: {}]   ;;  %s1741_s1 = inlined_call_operand.hbm [shape: bf16[768,256], index: 1, kind: input, shape index: {}]   ;;  %s1742_s2 = inlined_call_operand.hbm [shape: f32[1,256], index: 2, kind: input, shape index: {}]   ;;  %s1743_s3 = inlined_call_operand.hbm [shape: f32[1,2,256], index: 3, kind: output, shape index: {0}]   ;;  %s1744_s4 = inlined_call_operand.vmem [shape: f32[1,2,1], index: 4, kind: output, shape index: {1}]  }
   0x1   :  { %11 = vsyncpa [#allocation6], 0  ;;  %s37_s17 = sshll.u32 %s1741_s1, 4  ;;  %s38_s17 = int_to_ptr.hbm [resolvable:$true] %s37_s17 }
   0x2   :  { %12 = vsyncpa [#allocation4], 0  ;;  %s1646_s18 = smov [#allocation5]   ;;  %s24_s22 = sshll.u32 %s1740_s0, 4  ;;  %s25_s22 = int_to_ptr.hbm [resolvable:$true] %s24_s22 }
   0x3   :  { %s39_s19 = sshll.u32 %s1646_s18, 4  ;;  %s1647_s23 = smov 128   ;;  %s40_s19 = int_to_ptr.vmem [resolvable:$true] %s39_s19 }
   0x4   :  { %s1648_s24 = smov 8   ;;  %s1649_s25 = smov [#allocation2]  }
   0x5   :  { %45 = dma.hbm_to_vmem [thread:$0]  %s38_s17, 12288, %s40_s19, [#allocation6], %s1647_s23, %s1647_s23, %s1648_s24  }
   0x6   :  { %s26_s26 = sshll.u32 %s1649_s25, 4  ;;  %s1650_s27 = smov 384   ;;  %s27_s26 = int_to_ptr.vmem [resolvable:$true] %s26_s26 }
   0x7   :  { %s1651_s28 = smov 24   ;;  %s51_s30 = sshll.u32 %s1742_s2, 4  ;;  %s52_s30 = int_to_ptr.hbm [resolvable:$true] %s51_s30 }
   0x8   :  { %32 = dma.hbm_to_vmem [thread:$0]  %s25_s22, 768, %s27_s26, [#allocation3], %s1650_s27, %s1650_s27, %s1651_s28  }
   0x9   :  { %s1652_s5 = smov [#allocation7]  }
   0xa   :  { %s53_s6 = sshll.u32 %s1652_s5, 4  ;;  %s54_s6 = int_to_ptr.vmem [resolvable:$true] %s53_s6 }
   0xb   :  { %56 = dma.hbm_to_vmem [thread:$0]  %s52_s30, 32, %s54_s6, [#allocation6]  }
   0xc   :  { %1640 = dma.done.wait [#allocation3], 768  }
   0xd   :  { %1641 = vsyncadd [#allocation3], 4294966528 }
   0xe   :  { %1642 = dma.done.wait [#allocation6], 12320  }
   0xf   :  { %1643 = vsyncadd [#allocation6], 4294954976  ;;  %v1100_v0 = vld [vmem:[#allocation5 + $0x70] sm:$0xf]  ;;  %v1453_v1 = vld [vmem:[#allocation5 + $0x74] sm:$0xf0] }
  0x10   :  { %v1164_v2 = vld [vmem:[#allocation5 + $0xf0] sm:$0xf]  ;;  %v1101_v3 = vor.u32 %v1453_v1, %v1100_v0  ;;  %v1469_v4 = vld [vmem:[#allocation5 + $0xf4] sm:$0xf0]  ;;  %v1092_v11 = vld [vmem:[#allocation5 + $0x60] sm:$0xf] }
  0x11   :  { %v1228_v5 = vld [vmem:[#allocation5 + $0x170] sm:$0xf]  ;;  %v1485_v6 = vld [vmem:[#allocation5 + $0x174] sm:$0xf0]  ;;  %v1165_v7 = vor.u32 %v1469_v4, %v1164_v2  ;;  %v1451_v13 = vld [vmem:[#allocation5 + $0x64] sm:$0xf0] }
  0x12   :  { %v1229_v8 = vor.u32 %v1485_v6, %v1228_v5  ;;  %v1292_v9 = vld [vmem:[#allocation5 + $0x1f0] sm:$0xf]  ;;  %v1501_v10 = vld [vmem:[#allocation5 + $0x1f4] sm:$0xf0]  ;;  %743 = vmatpush.bf16.msra.mxu0 %v1101_v3  ;;  %v1156_v14 = vld [vmem:[#allocation5 + $0xe0] sm:$0xf]  ;;  %v1093_v16 = vor.u32 %v1451_v13, %v1092_v11 }
  0x13   :  { %v1293_v12 = vor.u32 %v1501_v10, %v1292_v9  ;;  %v1467_v15 = vld [vmem:[#allocation5 + $0xe4] sm:$0xf0]  ;;  %757 = vmatpush.bf16.msra.mxu1 %v1165_v7  ;;  %v1220_v18 = vld [vmem:[#allocation5 + $0x160] sm:$0xf]  ;;  %v1084_v23 = vld [vmem:[#allocation5 + $0x50] sm:$0xf] }
  0x14   :  { %771 = vmatpush.bf16.msra.mxu2 %v1229_v8  ;;  %v1157_v17 = vor.u32 %v1467_v15, %v1156_v14  ;;  %v1483_v19 = vld [vmem:[#allocation5 + $0x164] sm:$0xf0]  ;;  %v1284_v20 = vld [vmem:[#allocation5 + $0x1e0] sm:$0xf]  ;;  %v1449_v24 = vld [vmem:[#allocation5 + $0x54] sm:$0xf0] }
  0x15   :  { %785 = vmatpush.bf16.msra.mxu3 %v1293_v12  ;;  %v1221_v21 = vor.u32 %v1483_v19, %v1220_v18  ;;  %v1499_v22 = vld [vmem:[#allocation5 + $0x1e4] sm:$0xf0]  ;;  %v1148_v26 = vld [vmem:[#allocation5 + $0xd0] sm:$0xf]  ;;  %v1465_v27 = vld [vmem:[#allocation5 + $0xd4] sm:$0xf0]  ;;  %v1085_v29 = vor.u32 %v1449_v24, %v1084_v23 }
  0x16   :  { %v1285_v25 = vor.u32 %v1499_v22, %v1284_v20  ;;  %v1212_v28 = vld [vmem:[#allocation5 + $0x150] sm:$0xf]  ;;  %744 = vmatpush.bf16.msra.mxu0 %v1093_v16  ;;  %v1481_v30 = vld [vmem:[#allocation5 + $0x154] sm:$0xf0]  ;;  %v1149_v33 = vor.u32 %v1465_v27, %v1148_v26  ;;  %v1076_v35 = vld [vmem:[#allocation5 + $0x40] sm:$0xf] }
  0x17   :  { %v1276_v31 = vld [vmem:[#allocation5 + $0x1d0] sm:$0xf]  ;;  %v1497_v32 = vld [vmem:[#allocation5 + $0x1d4] sm:$0xf0]  ;;  %758 = vmatpush.bf16.msra.mxu1 %v1157_v17  ;;  %v1213_v34 = vor.u32 %v1481_v30, %v1212_v28  ;;  %v1447_v36 = vld [vmem:[#allocation5 + $0x44] sm:$0xf0] }
  0x18   :  { %772 = vmatpush.bf16.msra.mxu2 %v1221_v21  ;;  %v1140_v37 = vld [vmem:[#allocation5 + $0xc0] sm:$0xf]  ;;  %v1277_v38 = vor.u32 %v1497_v32, %v1276_v31  ;;  %v1463_v39 = vld [vmem:[#allocation5 + $0xc4] sm:$0xf0]  ;;  %v1077_v44 = vor.u32 %v1447_v36, %v1076_v35  ;;  %v1068_v47 = vld [vmem:[#allocation5 + $0x30] sm:$0xf] }
  0x19   :  { %786 = vmatpush.bf16.msra.mxu3 %v1285_v25  ;;  %v1204_v40 = vld [vmem:[#allocation5 + $0x140] sm:$0xf]  ;;  %v1479_v41 = vld [vmem:[#allocation5 + $0x144] sm:$0xf0]  ;;  %v1141_v45 = vor.u32 %v1463_v39, %v1140_v37  ;;  %v1445_v48 = vld [vmem:[#allocation5 + $0x34] sm:$0xf0] }
  0x1a   :  { %v1268_v42 = vld [vmem:[#allocation5 + $0x1c0] sm:$0xf]  ;;  %v1495_v43 = vld [vmem:[#allocation5 + $0x1c4] sm:$0xf0]  ;;  %745 = vmatpush.bf16.msra.mxu0 %v1085_v29  ;;  %v1205_v46 = vor.u32 %v1479_v41, %v1204_v40  ;;  %v1132_v49 = vld [vmem:[#allocation5 + $0xb0] sm:$0xf]  ;;  %v1069_v56 = vor.u32 %v1445_v48, %v1068_v47 }
  0x1b   :  { %759 = vmatpush.bf16.msra.mxu1 %v1149_v33  ;;  %v1269_v50 = vor.u32 %v1495_v43, %v1268_v42  ;;  %v1461_v51 = vld [vmem:[#allocation5 + $0xb4] sm:$0xf0]  ;;  %v1196_v52 = vld [vmem:[#allocation5 + $0x130] sm:$0xf]  ;;  %v1060_v59 = vld [vmem:[#allocation5 + $0x20] sm:$0xf] }
  0x1c   :  { %773 = vmatpush.bf16.msra.mxu2 %v1213_v34  ;;  %v1477_v53 = vld [vmem:[#allocation5 + $0x134] sm:$0xf0]  ;;  %v1260_v54 = vld [vmem:[#allocation5 + $0x1b0] sm:$0xf]  ;;  %v1133_v57 = vor.u32 %v1461_v51, %v1132_v49  ;;  %v1443_v60 = vld [vmem:[#allocation5 + $0x24] sm:$0xf0] }
  0x1d   :  { %787 = vmatpush.bf16.msra.mxu3 %v1277_v38  ;;  %v1493_v55 = vld [vmem:[#allocation5 + $0x1b4] sm:$0xf0]  ;;  %v1197_v58 = vor.u32 %v1477_v53, %v1196_v52  ;;  %v1124_v61 = vld [vmem:[#allocation5 + $0xa0] sm:$0xf]  ;;  %v1459_v63 = vld [vmem:[#allocation5 + $0xa4] sm:$0xf0]  ;;  %v1061_v4 = vor.u32 %v1443_v60, %v1060_v59 }
  0x1e   :  { %746 = vmatpush.bf16.msra.mxu0 %v1077_v44  ;;  %v1261_v62 = vor.u32 %v1493_v55, %v1260_v54  ;;  %v1188_v0 = vld [vmem:[#allocation5 + $0x120] sm:$0xf]  ;;  %v1475_v1 = vld [vmem:[#allocation5 + $0x124] sm:$0xf0]  ;;  %v1125_v5 = vor.u32 %v1459_v63, %v1124_v61  ;;  %v1052_v7 = vld [vmem:[#allocation5 + $0x10] sm:$0xf] }
  0x1f   :  { %760 = vmatpush.bf16.msra.mxu1 %v1141_v45  ;;  %v1252_v2 = vld [vmem:[#allocation5 + $0x1a0] sm:$0xf]  ;;  %v1491_v3 = vld [vmem:[#allocation5 + $0x1a4] sm:$0xf0]  ;;  %v1189_v6 = vor.u32 %v1475_v1, %v1188_v0  ;;  %v1441_v8 = vld [vmem:[#allocation5 + $0x14] sm:$0xf0] }
  0x20   :  { %774 = vmatpush.bf16.msra.mxu2 %v1205_v46  ;;  %v1116_v9 = vld [vmem:[#allocation5 + $0x90] sm:$0xf]  ;;  %v1253_v10 = vor.u32 %v1491_v3, %v1252_v2  ;;  %v1457_v11 = vld [vmem:[#allocation5 + $0x94] sm:$0xf0]  ;;  %v1053_v16 = vor.u32 %v1441_v8, %v1052_v7  ;;  %v1044_v17 = vld [vmem:[#allocation5] sm:$0xf] }
  0x21   :  { %788 = vmatpush.bf16.msra.mxu3 %v1269_v50  ;;  %v1180_v12 = vld [vmem:[#allocation5 + $0x110] sm:$0xf]  ;;  %v1473_v13 = vld [vmem:[#allocation5 + $0x114] sm:$0xf0]  ;;  %v1439_v18 = vld [vmem:[#allocation5 + $0x4] sm:$0xf0]  ;;  %v1117_v19 = vor.u32 %v1457_v11, %v1116_v9 }
  0x22   :  { %747 = vmatpush.bf16.msra.mxu0 %v1069_v56  ;;  %v1244_v14 = vld [vmem:[#allocation5 + $0x190] sm:$0xf]  ;;  %v1489_v15 = vld [vmem:[#allocation5 + $0x194] sm:$0xf0]  ;;  %v1181_v20 = vor.u32 %v1473_v13, %v1180_v12  ;;  %v1108_v21 = vld [vmem:[#allocation5 + $0x80] sm:$0xf]  ;;  %v1045_v31 = vor.u32 %v1439_v18, %v1044_v17 }
  0x23   :  { %761 = vmatpush.bf16.msra.mxu1 %v1133_v57  ;;  %v1455_v22 = vld [vmem:[#allocation5 + $0x84] sm:$0xf0]  ;;  %v1172_v23 = vld [vmem:[#allocation5 + $0x100] sm:$0xf]  ;;  %v1245_v24 = vor.u32 %v1489_v15, %v1244_v14  ;;  %v1356_v28 = vld [vmem:[#allocation5 + $0x270] sm:$0xf] }
  0x24   :  { %775 = vmatpush.bf16.msra.mxu2 %v1197_v58  ;;  %v1471_v25 = vld [vmem:[#allocation5 + $0x104] sm:$0xf0]  ;;  %v1236_v26 = vld [vmem:[#allocation5 + $0x180] sm:$0xf]  ;;  %v1517_v29 = vld [vmem:[#allocation5 + $0x274] sm:$0xf0]  ;;  %v1109_v35 = vor.u32 %v1455_v22, %v1108_v21 }
  0x25   :  { %789 = vmatpush.bf16.msra.mxu3 %v1261_v62  ;;  %v1487_v27 = vld [vmem:[#allocation5 + $0x184] sm:$0xf0]  ;;  %v1420_v30 = vld [vmem:[#allocation5 + $0x2f0] sm:$0xf]  ;;  %v1533_v32 = vld [vmem:[#allocation5 + $0x2f4] sm:$0xf0]  ;;  %v1173_v36 = vor.u32 %v1471_v25, %v1172_v23  ;;  %v1357_v40 = vor.u32 %v1517_v29, %v1356_v28 }
  0x26   :  { %748 = vmatpush.bf16.msra.mxu0 %v1061_v4  ;;  %v1452_v33 = vld [vmem:[#allocation5 + $0x74] sm:$0xf]  ;;  %v1102_v34 = vld [vmem:[#allocation5 + $0x78] sm:$0xf0]  ;;  %v1237_v39 = vor.u32 %v1487_v27, %v1236_v26  ;;  %v1348_v41 = vld [vmem:[#allocation5 + $0x260] sm:$0xf]  ;;  %v1421_v42 = vor.u32 %v1533_v32, %v1420_v30 }
  0x27   :  { %762 = vmatpush.bf16.msra.mxu1 %v1125_v5  ;;  %v1468_v37 = vld [vmem:[#allocation5 + $0xf4] sm:$0xf]  ;;  %v1166_v38 = vld [vmem:[#allocation5 + $0xf8] sm:$0xf0]  ;;  %v1105_v43 = vor.u32 %v1452_v33, %v1102_v34  ;;  %v1515_v44 = vld [vmem:[#allocation5 + $0x264] sm:$0xf0] }
  0x28   :  { %776 = vmatpush.bf16.msra.mxu2 %v1189_v6  ;;  %v1412_v45 = vld [vmem:[#allocation5 + $0x2e0] sm:$0xf]  ;;  %v1531_v46 = vld [vmem:[#allocation5 + $0x2e4] sm:$0xf0]  ;;  %v1169_v47 = vor.u32 %v1468_v37, %v1166_v38  ;;  %v1450_v48 = vld [vmem:[#allocation5 + $0x64] sm:$0xf]  ;;  %v1349_v54 = vor.u32 %v1515_v44, %v1348_v41 }
  0x29   :  { %790 = vmatpush.bf16.msra.mxu3 %v1253_v10  ;;  %v1094_v49 = vld [vmem:[#allocation5 + $0x68] sm:$0xf0]  ;;  %v1466_v50 = vld [vmem:[#allocation5 + $0xe4] sm:$0xf]  ;;  %v1020_v52 = vld [vmem:[#allocation2] sm:$0xf]  ;;  %v1413_v59 = vor.u32 %v1531_v46, %v1412_v45 }
  0x2a   :  { %749 = vmatpush.bf16.msra.mxu0 %v1053_v16  ;;  %v1158_v51 = vld [vmem:[#allocation5 + $0xe8] sm:$0xf0]  ;;  %v1435_v53 = vld [vmem:[#allocation2 + $0x14] sm:$0xf0]  ;;  %v1340_v55 = vld [vmem:[#allocation5 + $0x250] sm:$0xf]  ;;  %v1097_v60 = vor.u32 %v1450_v48, %v1094_v49 }
  0x2b   :  { %763 = vmatpush.bf16.msra.mxu1 %v1117_v19  ;;  %v1513_v56 = vld [vmem:[#allocation5 + $0x254] sm:$0xf0]  ;;  %v1404_v57 = vld [vmem:[#allocation5 + $0x2d0] sm:$0xf]  ;;  %v1690_v58 = vor.u32 %v1435_v53, %v1020_v52  ;;  %v1448_v62 = vld [vmem:[#allocation5 + $0x54] sm:$0xf]  ;;  %v1161_v0 = vor.u32 %v1466_v50, %v1158_v51 }
  0x2c   :  { %777 = vmatpush.bf16.msra.mxu2 %v1181_v20  ;;  %v1529_v61 = vld [vmem:[#allocation5 + $0x2d4] sm:$0xf0]  ;;  %v1086_v63 = vld [vmem:[#allocation5 + $0x58] sm:$0xf0]  ;;  %v1464_v1 = vld [vmem:[#allocation5 + $0xd4] sm:$0xf]  ;;  %v1341_v8 = vor.u32 %v1513_v56, %v1340_v55 }
  0x2d   :  { %791 = vmatpush.bf16.msra.mxu3 %v1245_v24  ;;  %v1432_v2 = vld [vmem:[#allocation2 + $0x4] sm:$0xf]  ;;  %v1022_v3 = vld [vmem:[#allocation2 + $0x18] sm:$0xf0]  ;;  %v1150_v4 = vld [vmem:[#allocation5 + $0xd8] sm:$0xf0]  ;;  %v1405_v12 = vor.u32 %v1529_v61, %v1404_v57  ;;  %v1089_v13 = vor.u32 %v1448_v62, %v1086_v63 }
  0x2e   :  { %750 = vmatpush.bf16.msra.mxu0 %v1045_v31  ;;  %v1693_v5 = vor.u32 %v1432_v2, %v1022_v3  ;;  %v1028_v6 = vld [vmem:[#allocation2 + $0x8] sm:$0xf]  ;;  %v1436_v7 = vld [vmem:[#allocation2 + $0x1c] sm:$0xf0]  ;;  %v1332_v9 = vld [vmem:[#allocation5 + $0x240] sm:$0xf]  ;;  %v1153_v17 = vor.u32 %v1464_v1, %v1150_v4 }
  0x2f   :  { %764 = vmatpush.bf16.msra.mxu1 %v1109_v35  ;;  %v1511_v10 = vld [vmem:[#allocation5 + $0x244] sm:$0xf0]  ;;  %v1695_v11 = vor.u32 %v1436_v7, %v1028_v6  ;;  %v1396_v14 = vld [vmem:[#allocation5 + $0x2c0] sm:$0xf]  ;;  %v1446_v16 = vld [vmem:[#allocation5 + $0x44] sm:$0xf] }
  0x30   :  { %778 = vmatpush.bf16.msra.mxu2 %v1173_v36  ;;  %v1527_v15 = vld [vmem:[#allocation5 + $0x2c4] sm:$0xf0]  ;;  %v1078_v18 = vld [vmem:[#allocation5 + $0x48] sm:$0xf0]  ;;  %v1433_v19 = vld [vmem:[#allocation2 + $0xc] sm:$0xf]  ;;  %v1333_v24 = vor.u32 %v1511_v10, %v1332_v9 }
  0x31   :  { %792 = vmatpush.bf16.msra.mxu3 %v1237_v39  ;;  %751 = vmatmul.bf16.vlgmr.msra.gmra.mxu0 %v1690_v58  ;;  %v1030_v20 = vld [vmem:[#allocation2 + $0x20] sm:$0xf0]  ;;  %v1462_v21 = vld [vmem:[#allocation5 + $0xc4] sm:$0xf]  ;;  %v1142_v22 = vld [vmem:[#allocation5 + $0xc8] sm:$0xf0]  ;;  %v1397_v25 = vor.u32 %v1527_v15, %v1396_v14  ;;  %v1081_v26 = vor.u32 %v1446_v16, %v1078_v18 }
  0x32   :  { %799 = vmatpush.bf16.msrb.mxu0 %v1357_v40  ;;  %765 = vmatmul.bf16.vlgmr.msra.gmra.mxu1 %v1693_v5  ;;  %v1699_v23 = vor.u32 %v1433_v19, %v1030_v20  ;;  %v1324_v27 = vld [vmem:[#allocation5 + $0x230] sm:$0xf]  ;;  %v1509_v28 = vld [vmem:[#allocation5 + $0x234] sm:$0xf0]  ;;  %v1145_v30 = vor.u32 %v1462_v21, %v1142_v22  ;;  %v1444_v32 = vld [vmem:[#allocation5 + $0x34] sm:$0xf] }
  0x33   :  { %813 = vmatpush.bf16.msrb.mxu1 %v1421_v42  ;;  %779 = vmatmul.bf16.vlgmr.msra.gmra.mxu2 %v1695_v11  ;;  %v1388_v29 = vld [vmem:[#allocation5 + $0x2b0] sm:$0xf]  ;;  %v1525_v31 = vld [vmem:[#allocation5 + $0x2b4] sm:$0xf0]  ;;  %v1070_v33 = vld [vmem:[#allocation5 + $0x38] sm:$0xf0]  ;;  %v1325_v36 = vor.u32 %v1509_v28, %v1324_v27 }
  0x34   :  { %827 = vmatpush.bf16.msrb.mxu2 %v1105_v43  ;;  %v1460_v34 = vld [vmem:[#allocation5 + $0xb4] sm:$0xf]  ;;  %v1134_v35 = vld [vmem:[#allocation5 + $0xb8] sm:$0xf0]  ;;  %793 = vmatmul.bf16.vlgmr.msra.gmra.mxu3 %v1699_v23  ;;  %v1389_v37 = vor.u32 %v1525_v31, %v1388_v29  ;;  %v1073_v38 = vor.u32 %v1444_v32, %v1070_v33  ;;  %v1316_v39 = vld [vmem:[#allocation5 + $0x220] sm:$0xf] }
  0x35   :  { %841 = vmatpush.bf16.msrb.mxu3 %v1169_v47  ;;  %v1507_v40 = vld [vmem:[#allocation5 + $0x224] sm:$0xf0]  ;;  %v1380_v41 = vld [vmem:[#allocation5 + $0x2a0] sm:$0xf]  ;;  %v1137_v42 = vor.u32 %v1460_v34, %v1134_v35  ;;  %v1442_v44 = vld [vmem:[#allocation5 + $0x24] sm:$0xf] }
  0x36   :  { %800 = vmatpush.bf16.msrb.mxu0 %v1349_v54  ;;  %v1523_v43 = vld [vmem:[#allocation5 + $0x2a4] sm:$0xf0]  ;;  %v1062_v45 = vld [vmem:[#allocation5 + $0x28] sm:$0xf0]  ;;  %v1458_v46 = vld [vmem:[#allocation5 + $0xa4] sm:$0xf]  ;;  %v1317_v48 = vor.u32 %v1507_v40, %v1316_v39 }
  0x37   :  { %814 = vmatpush.bf16.msrb.mxu1 %v1413_v59  ;;  %v1126_v47 = vld [vmem:[#allocation5 + $0xa8] sm:$0xf0]  ;;  %v1308_v49 = vld [vmem:[#allocation5 + $0x210] sm:$0xf]  ;;  %v1381_v50 = vor.u32 %v1523_v43, %v1380_v41  ;;  %v1065_v51 = vor.u32 %v1442_v44, %v1062_v45  ;;  %v1505_v52 = vld [vmem:[#allocation5 + $0x214] sm:$0xf0] }
  0x38   :  { %828 = vmatpush.bf16.msrb.mxu2 %v1097_v60  ;;  %v1372_v53 = vld [vmem:[#allocation5 + $0x290] sm:$0xf]  ;;  %v1521_v54 = vld [vmem:[#allocation5 + $0x294] sm:$0xf0]  ;;  %v1129_v55 = vor.u32 %v1458_v46, %v1126_v47  ;;  %v1440_v56 = vld [vmem:[#allocation5 + $0x14] sm:$0xf]  ;;  %v1309_v63 = vor.u32 %v1505_v52, %v1308_v49 }
  0x39   :  { %842 = vmatpush.bf16.msrb.mxu3 %v1161_v0  ;;  %v1054_v57 = vld [vmem:[#allocation5 + $0x18] sm:$0xf0]  ;;  %v1456_v59 = vld [vmem:[#allocation5 + $0x94] sm:$0xf]  ;;  %v1300_v61 = vld [vmem:[#allocation5 + $0x200] sm:$0xf]  ;;  %v1373_v4 = vor.u32 %v1521_v54, %v1372_v53 }
  0x3a   :  { %801 = vmatpush.bf16.msrb.mxu0 %v1341_v8  ;;  %v1118_v60 = vld [vmem:[#allocation5 + $0x98] sm:$0xf0]  ;;  %v1503_v62 = vld [vmem:[#allocation5 + $0x204] sm:$0xf0]  ;;  %v1364_v0 = vld [vmem:[#allocation5 + $0x280] sm:$0xf]  ;;  %v1057_v6 = vor.u32 %v1440_v56, %v1054_v57 }
  0x3b   :  { %815 = vmatpush.bf16.msrb.mxu1 %v1405_v12  ;;  %v1519_v1 = vld [vmem:[#allocation5 + $0x284] sm:$0xf0]  ;;  %v1438_v2 = vld [vmem:[#allocation5 + $0x4] sm:$0xf]  ;;  %v1046_v3 = vld [vmem:[#allocation5 + $0x8] sm:$0xf0]  ;;  %v1301_v21 = vor.u32 %v1503_v62, %v1300_v61 }
  0x3c   :  { %829 = vmatpush.bf16.msrb.mxu2 %v1089_v13  ;;  %v1454_v7 = vld [vmem:[#allocation5 + $0x84] sm:$0xf]  ;;  %v1110_v8 = vld [vmem:[#allocation5 + $0x88] sm:$0xf0]  ;;  %v1484_v9 = vld [vmem:[#allocation5 + $0x174] sm:$0xf]  ;;  %v1121_v13 = vor.u32 %v1456_v59, %v1118_v60  ;;  %v1049_v27 = vor.u32 %v1438_v2, %v1046_v3 }
  0x3d   :  { %843 = vmatpush.bf16.msrb.mxu3 %v1153_v17  ;;  %v1230_v10 = vld [vmem:[#allocation5 + $0x178] sm:$0xf0]  ;;  %v1500_v12 = vld [vmem:[#allocation5 + $0x1f4] sm:$0xf]  ;;  %v1036_v19 = vld [vmem:[#allocation2 + $0x10] sm:$0xf]  ;;  %v1113_v31 = vor.u32 %v1454_v7, %v1110_v8 }
  0x3e   :  { %802 = vmatpush.bf16.msrb.mxu0 %v1333_v24  ;;  %v1294_v14 = vld [vmem:[#allocation5 + $0x1f8] sm:$0xf0]  ;;  %v1516_v15 = vld [vmem:[#allocation5 + $0x274] sm:$0xf]  ;;  %v1437_v20 = vld [vmem:[#allocation2 + $0x24] sm:$0xf0]  ;;  %v1233_v32 = vor.u32 %v1484_v9, %v1230_v10 }
  0x3f   :  { %816 = vmatpush.bf16.msrb.mxu1 %v1397_v25  ;;  %v1358_v16 = vld [vmem:[#allocation5 + $0x278] sm:$0xf0]  ;;  %v1532_v17 = vld [vmem:[#allocation5 + $0x2f4] sm:$0xf]  ;;  %v1434_v22 = vld [vmem:[#allocation2 + $0x14] sm:$0xf]  ;;  %v1297_v33 = vor.u32 %v1500_v12, %v1294_v14  ;;  %v1702_v45 = vor.u32 %v1437_v20, %v1036_v19 }
  0x40   :  { %830 = vmatpush.bf16.msrb.mxu2 %v1081_v26  ;;  %v1422_v18 = vld [vmem:[#allocation5 + $0x2f8] sm:$0xf0]  ;;  %v83_v24 = vld [vmem:[#allocation2] sm:$0xff]  ;;  %v1365_v26 = vor.u32 %v1519_v1, %v1364_v0  ;;  %v85_v28 = vld [vmem:[#allocation2 + $0x10] sm:$0xff]  ;;  %v1361_v34 = vor.u32 %v1516_v15, %v1358_v16  ;;  %vm936_vm6 = vcmask 130048   ;;  %vm79_vm7 = vcmask 1024  }
  0x41   :  { %844 = vmatpush.bf16.msrb.mxu3 %v1145_v30  ;;  %v84_v25 = vld [vmem:[#allocation2 + $0x8] sm:$0xff]  ;;  %v89_v29 = vand.u32 2147450879, %v83_v24  ;;  %v1286_v39 = vld [vmem:[#allocation5 + $0x1e8] sm:$0xf0]  ;;  %v1425_v44 = vor.u32 %v1532_v17, %v1422_v18  ;;  %v87_v2 = vld [vmem:[#allocation2 + $0x20] sm:$0xff] }
  0x42   :  { %803 = vmatpush.bf16.msrb.mxu0 %v1325_v36  ;;  %v90_v30 = vand.u32 2147450879, %v84_v25  ;;  %v1038_v35 = vld [vmem:[#allocation2 + $0x28] sm:$0xf0]  ;;  %v1482_v36 = vld [vmem:[#allocation5 + $0x164] sm:$0xf] }
  0x43   :  { %817 = vmatpush.bf16.msrb.mxu1 %v1389_v37  ;;  %v1222_v37 = vld [vmem:[#allocation5 + $0x168] sm:$0xf0]  ;;  %v91_v40 = vand.u32 2147450879, %v85_v28  ;;  %v95_v41 = vunpack.c.l.bf16 %v89_v29  ;;  %v1514_v46 = vld [vmem:[#allocation5 + $0x264] sm:$0xf]  ;;  %v1704_v49 = vor.u32 %v1434_v22, %v1038_v35 }
  0x44   :  { %831 = vmatpush.bf16.msrb.mxu2 %v1073_v38  ;;  %v1498_v38 = vld [vmem:[#allocation5 + $0x1e4] sm:$0xf]  ;;  %v97_v43 = vunpack.c.l.bf16 %v90_v30  ;;  %v1350_v47 = vld [vmem:[#allocation5 + $0x268] sm:$0xf0]  ;;  %v98_v52 = vunpack.c.h.bf16 %v90_v30  ;;  %v1214_v56 = vld [vmem:[#allocation5 + $0x158] sm:$0xf0] }
  0x45   :  { %845 = vmatpush.bf16.msrb.mxu3 %v1137_v42  ;;  %v96_v42 = vunpack.c.h.bf16 %v89_v29  ;;  %v86_v54 = vld [vmem:[#allocation2 + $0x18] sm:$0xff]  ;;  %v1496_v57 = vld [vmem:[#allocation5 + $0x1d4] sm:$0xf]  ;;  %v1278_v59 = vld [vmem:[#allocation5 + $0x1d8] sm:$0xf0]  ;;  %v1289_v60 = vor.u32 %v1498_v38, %v1286_v39  ;;  %v1353_v61 = vor.u32 %v1514_v46, %v1350_v47  ;;  %v99_v0 = vunpack.c.l.bf16 %v91_v40  ;;  %s1655_s11 = smov [#allocation8]  }
  0x46   :  { %804 = vmatpush.bf16.msrb.mxu0 %v1317_v48  ;;  %v1530_v48 = vld [vmem:[#allocation5 + $0x2e4] sm:$0xf]  ;;  %v1512_v62 = vld [vmem:[#allocation5 + $0x254] sm:$0xf]  ;;  %v93_v7 = vand.u32 2147450879, %v87_v2  ;;  %v100_v12 = vunpack.c.h.bf16 %v91_v40  ;;  %v1281_v18 = vor.u32 %v1496_v57, %v1278_v59 }
  0x47   :  { %818 = vmatpush.bf16.msrb.mxu1 %v1381_v50  ;;  %v1414_v50 = vld [vmem:[#allocation5 + $0x2e8] sm:$0xf0]  ;;  %v107_v53 = vadd.f32 %v96_v42, %v95_v41  ;;  %v1528_v9 = vld [vmem:[#allocation5 + $0x2d4] sm:$0xf]  ;;  %v1406_v10 = vld [vmem:[#allocation5 + $0x2d8] sm:$0xf0] }
  0x48   :  { %832 = vmatpush.bf16.msrb.mxu2 %v1065_v51  ;;  %v1480_v51 = vld [vmem:[#allocation5 + $0x154] sm:$0xf]  ;;  %v1417_v3 = vor.u32 %v1530_v48, %v1414_v50  ;;  %v103_v17 = vunpack.c.l.bf16 %v93_v7  ;;  %v1478_v20 = vld [vmem:[#allocation5 + $0x144] sm:$0xf]  ;;  %v1409_v24 = vor.u32 %v1528_v9, %v1406_v10  ;;  %v1270_v25 = vld [vmem:[#allocation5 + $0x1c8] sm:$0xf0]  ;;  %v104_v28 = vunpack.c.h.bf16 %v93_v7 }
  0x49   :  { %846 = vmatpush.bf16.msrb.mxu3 %v1129_v55  ;;  %v1225_v55 = vor.u32 %v1482_v36, %v1222_v37  ;;  %v108_v1 = vadd.f32 %v107_v53, %v97_v43  ;;  %v1217_v8 = vor.u32 %v1480_v51, %v1214_v56  ;;  %v1494_v22 = vld [vmem:[#allocation5 + $0x1c4] sm:$0xf]  ;;  %v1398_v30 = vld [vmem:[#allocation5 + $0x2c8] sm:$0xf0]  ;;  %v1476_v37 = vld [vmem:[#allocation5 + $0x134] sm:$0xf] }
  0x4a   :  { %805 = vmatpush.bf16.msrb.mxu0 %v1309_v63  ;;  %v1342_v63 = vld [vmem:[#allocation5 + $0x258] sm:$0xf0]  ;;  %v1273_v35 = vor.u32 %v1494_v22, %v1270_v25  ;;  %v1492_v39 = vld [vmem:[#allocation5 + $0x1b4] sm:$0xf]  ;;  %v1490_v56 = vld [vmem:[#allocation5 + $0x1a4] sm:$0xf] }
  0x4b   :  { %819 = vmatpush.bf16.msrb.mxu1 %v1373_v4  ;;  %v88_v4 = vld [vmem:[#allocation2 + $0x28] sm:$0xff]  ;;  %v1345_v19 = vor.u32 %v1512_v62, %v1342_v63  ;;  %v1508_v42 = vld [vmem:[#allocation5 + $0x234] sm:$0xf]  ;;  %v1254_v59 = vld [vmem:[#allocation5 + $0x1a8] sm:$0xf0]  ;;  %vm969_vm8 = vcmask 1041408  }
  0x4c   :  { %833 = vmatpush.bf16.msrb.mxu2 %v1057_v6  ;;  %v92_v6 = vand.u32 2147450879, %v86_v54  ;;  %v94_v14 = vand.u32 2147450879, %v88_v4  ;;  %v1198_v38 = vld [vmem:[#allocation5 + $0x138] sm:$0xf0]  ;;  %v1257_v2 = vor.u32 %v1490_v56, %v1254_v59 }
  0x4d   :  { %847 = vmatpush.bf16.msrb.mxu3 %v1121_v13  ;;  %v109_v13 = vadd.f32 %v108_v1, %v98_v52  ;;  %v1262_v41 = vld [vmem:[#allocation5 + $0x1b8] sm:$0xf0]  ;;  %v1524_v47 = vld [vmem:[#allocation5 + $0x2b4] sm:$0xf]  ;;  %v1201_v50 = vor.u32 %v1476_v37, %v1198_v38  ;;  %v1474_v54 = vld [vmem:[#allocation5 + $0x124] sm:$0xf] }
  0x4e   :  { %806 = vmatpush.bf16.msrb.mxu0 %v1301_v21  ;;  %v101_v15 = vunpack.c.l.bf16 %v92_v6  ;;  %v102_v16 = vunpack.c.h.bf16 %v92_v6  ;;  %v1206_v21 = vld [vmem:[#allocation5 + $0x148] sm:$0xf0]  ;;  %v1326_v43 = vld [vmem:[#allocation5 + $0x238] sm:$0xf0]  ;;  %v1265_v52 = vor.u32 %v1492_v39, %v1262_v41  ;;  %v1522_v63 = vld [vmem:[#allocation5 + $0x2a4] sm:$0xf] }
  0x4f   :  { %820 = vmatpush.bf16.msrb.mxu1 %v1365_v26  ;;  %v1510_v26 = vld [vmem:[#allocation5 + $0x244] sm:$0xf]  ;;  %v1390_v48 = vld [vmem:[#allocation5 + $0x2b8] sm:$0xf0]  ;;  %v1329_v53 = vor.u32 %v1508_v42, %v1326_v43  ;;  %v1472_v4 = vld [vmem:[#allocation5 + $0x114] sm:$0xf] }
  0x50   :  { %834 = vmatpush.bf16.msrb.mxu2 %v1049_v27  ;;  %v1334_v27 = vld [vmem:[#allocation5 + $0x248] sm:$0xf0]  ;;  %v114_v29 = vadd.f32 %v102_v16, %v101_v15  ;;  %v1393_v57 = vor.u32 %v1524_v47, %v1390_v48  ;;  %v1182_v6 = vld [vmem:[#allocation5 + $0x118] sm:$0xf0]  ;;  %v1488_v7 = vld [vmem:[#allocation5 + $0x194] sm:$0xf] }
  0x51   :  { %848 = vmatpush.bf16.msrb.mxu3 %v1113_v31  ;;  %807 = vmatmul.bf16.vlgmr.msrb.gmra.mxu0 %v1702_v45  ;;  %v1337_v36 = vor.u32 %v1510_v26, %v1334_v27  ;;  %v1246_v9 = vld [vmem:[#allocation5 + $0x198] sm:$0xf0]  ;;  %v1504_v10 = vld [vmem:[#allocation5 + $0x214] sm:$0xf]  ;;  %v1185_v15 = vor.u32 %v1472_v4, %v1182_v6  ;;  %v1238_v22 = vld [vmem:[#allocation5 + $0x188] sm:$0xf0] }
  0x52   :  { %855 = vmatpush.bf16.msra.mxu0 %v1233_v32  ;;  %821 = vmatmul.bf16.vlgmr.msrb.gmra.mxu1 %v1704_v49  ;;  %v1209_v32 = vor.u32 %v1478_v20, %v1206_v21  ;;  %v1249_v16 = vor.u32 %v1488_v7, %v1246_v9  ;;  %v1486_v20 = vld [vmem:[#allocation5 + $0x184] sm:$0xf]  ;;  %v1366_v26 = vld [vmem:[#allocation5 + $0x288] sm:$0xf0]  ;;  %s997_s12 = sshll.u32 %s1655_s11, 4  ;;  %s999_s15 = sshll.u32 %s1743_s3, 4  ;;  %s998_s12 = int_to_ptr.vmem [resolvable:$true] %s997_s12  ;;  %s1000_s15 = int_to_ptr.hbm [resolvable:$true] %s999_s15 }
  0x53   :  { %869 = vmatpush.bf16.msra.mxu1 %v1297_v33  ;;  %835 = vmatmul.bf16.vlgmr.msrb.gmra.mxu2 %v1690_v58  ;;  %v110_v58 = vadd.f32 %v109_v13, %v99_v0  ;;  %v105_v33 = vunpack.c.l.bf16 %v94_v14  ;;  %v1382_v0 = vld [vmem:[#allocation5 + $0x2a8] sm:$0xf0]  ;;  %v1520_v13 = vld [vmem:[#allocation5 + $0x294] sm:$0xf]  ;;  %v1518_v25 = vld [vmem:[#allocation5 + $0x284] sm:$0xf] }
  0x54   :  { %883 = vmatpush.bf16.msra.mxu2 %v1361_v34  ;;  %849 = vmatmul.bf16.vlgmr.msrb.gmra.mxu3 %v1693_v5  ;;  %v1526_v5 = vld [vmem:[#allocation5 + $0x2c4] sm:$0xf]  ;;  %v115_v34 = vadd.f32 %v114_v29, %v103_v17 }
  0x55   :  { %897 = vmatpush.bf16.msra.mxu3 %v1425_v44  ;;  %v111_v31 = vadd.f32 %v110_v58, %v100_v12  ;;  %v1401_v40 = vor.u32 %v1526_v5, %v1398_v30  ;;  %v106_v44 = vunpack.c.h.bf16 %v94_v14  ;;  %v1310_v12 = vld [vmem:[#allocation5 + $0x218] sm:$0xf0]  ;;  %v1502_v58 = vld [vmem:[#allocation5 + $0x204] sm:$0xf]  ;;  %v1369_v5 = vor.u32 %v1518_v25, %v1366_v26 }
  0x56   :  { %856 = vmatpush.bf16.msra.mxu0 %v1225_v55  ;;  %v116_v46 = vadd.f32 %v115_v34, %v104_v28  ;;  %v1190_v55 = vld [vmem:[#allocation5 + $0x128] sm:$0xf0]  ;;  %v1374_v14 = vld [vmem:[#allocation5 + $0x298] sm:$0xf0]  ;;  %v1313_v17 = vor.u32 %v1504_v10, %v1310_v12  ;;  %v1241_v28 = vor.u32 %v1486_v20, %v1238_v22  ;;  %v1653_v30 = vmov 0.0  }
  0x57   :  { %870 = vmatpush.bf16.msra.mxu1 %v1289_v60  ;;  %112 = vadd.xlane.f32.xlu0 %v111_v31  ;;  %v1506_v60 = vld [vmem:[#allocation5 + $0x224] sm:$0xf]  ;;  %v1193_v1 = vor.u32 %v1474_v54, %v1190_v55  ;;  %v1377_v21 = vor.u32 %v1520_v13, %v1374_v14  ;;  %78 = vst [vmem:[#allocation8] sm:$0xf] %v1653_v30  ;;  %v1715_v31 = vld [vmem:[#allocation7] sm:$0x3] }
  0x58   :  { %884 = vmatpush.bf16.msra.mxu2 %v1353_v61  ;;  %v117_v51 = vadd.f32 %v116_v46, %v105_v33  ;;  %v1318_v61 = vld [vmem:[#allocation5 + $0x228] sm:$0xf0]  ;;  %v229_v33 = vperm.slane %v1715_v31, 0  ;;  %v919_v46 = vlaneseq  ;;  %v1654_v12 = vmov 1.0|1.0  }
  0x59   :  { %898 = vmatpush.bf16.msra.mxu3 %v1417_v3  ;;  %v1321_v3 = vor.u32 %v1506_v60, %v1318_v61  ;;  %80 = vst.msk [vmem:[%s1744_s4] sm:$0x3] %vm79_vm7, %v1653_v30 }
  0x5a   :  { %857 = vmatpush.bf16.msra.mxu0 %v1217_v8  ;;  %v118_v62 = vadd.f32 %v117_v51, %v106_v44  ;;  %v1385_v8 = vor.u32 %v1522_v63, %v1382_v0  ;;  %v920_v59 = vand.u32 127, %v919_v46 }
  0x5b   :  { %871 = vmatpush.bf16.msra.mxu1 %v1281_v18  ;;  %v1470_v18 = vld [vmem:[#allocation5 + $0x104] sm:$0xf] }
  0x5c   :  { %885 = vmatpush.bf16.msra.mxu2 %v1345_v19  ;;  %v1174_v19 = vld [vmem:[#allocation5 + $0x108] sm:$0xf0] }
  0x5d   :  { %899 = vmatpush.bf16.msra.mxu3 %v1409_v24  ;;  %v1302_v24 = vld [vmem:[#allocation5 + $0x208] sm:$0xf0]  ;;  %v1177_v27 = vor.u32 %v1470_v18, %v1174_v19 }
  0x5e   :  { %858 = vmatpush.bf16.msra.mxu0 %v1209_v32  ;;  %v1305_v29 = vor.u32 %v1502_v58, %v1302_v24 }
  0x5f   :  { %872 = vmatpush.bf16.msra.mxu1 %v1273_v35  ;;  %119 = vadd.xlane.f32.xlu0 %v118_v62 }
  0x60   :  { %886 = vmatpush.bf16.msra.mxu2 %v1337_v36 }
  0x61   :  { %900 = vmatpush.bf16.msra.mxu3 %v1401_v40 }
  0x62   :  { %859 = vmatpush.bf16.msra.mxu0 %v1201_v50 }
  0x63   :  { %873 = vmatpush.bf16.msra.mxu1 %v1265_v52  ;;  %v924_v52 = vshrl.u32 %v919_v46, 7 }
  0x64   :  { %887 = vmatpush.bf16.msra.mxu2 %v1329_v53 }
  0x65   :  { %901 = vmatpush.bf16.msra.mxu3 %v1393_v57  ;;  %v925_v54 = vmul.u32 8, %v924_v52 }
  0x66   :  { %860 = vmatpush.bf16.msra.mxu0 %v1193_v1 }
  0x67   :  { %874 = vmatpush.bf16.msra.mxu1 %v1257_v2  ;;  %v927_v60 = vadd.s32 8, %v925_v54  ;;  %vm926_vm1 = vcmp.ge.s32.totalorder %v920_v59, %v925_v54 }
  0x68   :  { %888 = vmatpush.bf16.msra.mxu2 %v1321_v3 }
  0x69   :  { %902 = vmatpush.bf16.msra.mxu3 %v1385_v8  ;;  %vm928_vm2 = vcmp.lt.s32.totalorder %v920_v59, %v927_v60 }
  0x6a   :  { %861 = vmatpush.bf16.msra.mxu0 %v1185_v15  ;;  %vm929_vm3 = vmand %vm926_vm1, %vm928_vm2 }
  0x6b   :  { %875 = vmatpush.bf16.msra.mxu1 %v1249_v16  ;;  %v1426_v4 = vsel %vm929_vm3, 1.0, %v1653_v30 }
  0x6c   :  { %889 = vmatpush.bf16.msra.mxu2 %v1313_v17  ;;  %v932_v8 = vpack.c.bf16 %v1426_v4, %v1426_v4  ;;  %v230_v17 = vperm.slane %v1715_v31, 1 }
  0x6d   :  { %903 = vmatpush.bf16.msra.mxu3 %v1377_v21 }
  0x6e   :  { %862 = vmatpush.bf16.msra.mxu0 %v1177_v27 }
  0x6f   :  { %876 = vmatpush.bf16.msra.mxu1 %v1241_v28 }
  0x70   :  { %890 = vmatpush.bf16.msra.mxu2 %v1305_v29 }
  0x71   :  { %904 = vmatpush.bf16.msra.mxu3 %v1369_v5  ;;  %863 = vmatmul.bf16.vlgmr.msra.gmra.mxu0 %v1695_v11 }
  0x72   :  { %877 = vmatmul.bf16.vlgmr.msra.gmra.mxu1 %v1699_v23 }
  0x73   :  { %891 = vmatmul.bf16.vlgmr.msra.gmra.mxu2 %v1702_v45 }
  0x74   :  { %905 = vmatmul.bf16.vlgmr.msra.gmra.mxu3 %v1704_v49 }
  0xae   :  { %v752_v32 = vpop.f32.mrf.mxu0 }
  0xaf   :  { %v766_v34 = vpop.f32.mrf.mxu1  ;;  %v753_v35 = vadd.f32 %v752_v32, %v229_v33 }
  0xb1   :  { %v767_v37 = vadd.f32 %v766_v34, %v753_v35 }
  0xb6   :  { %v780_v36 = vpop.f32.mrf.mxu2  ;;  %v754_v38 = vpop.f32.mrf.mxu0 }
  0xb7   :  { %v768_v11 = vpop.f32.mrf.mxu1  ;;  %v794_v39 = vpop.f32.mrf.mxu3  ;;  %v755_v23 = vadd.f32 %v754_v38, %v229_v33  ;;  %v781_v40 = vadd.f32 %v780_v36, %v767_v37 }
  0xb9   :  { %v769_v45 = vadd.f32 %v768_v11, %v755_v23  ;;  %v795_v41 = vadd.f32 %v794_v39, %v781_v40 }
  0xbe   :  { %v782_v42 = vpop.f32.mrf.mxu2 }
  0xbf   :  { %v783_v50 = vadd.f32 %v782_v42, %v769_v45  ;;  %v796_v51 = vpop.f32.mrf.mxu3 }
  0xc1   :  { %v797_v56 = vadd.f32 %v796_v51, %v783_v50  ;;  %v933_v50 = vld [vmem:[#allocation8] sm:$0xf] }
  0xca   :  { %v113_v49 = vpop.xlane.xlu0 %112 }
  0xcb   :  { %v121_v43 = vpack.c.bf16 %v113_v49, %v113_v49 }
  0xcd   :  { %v123_v53 = vunpack.c.l.bf16 %v121_v43  ;;  %v974_v43 = vld [vmem:[%s1744_s4] sm:$0x3] }
  0xce   :  { %v808_v44 = vpop.f32.mrf.mxu0 }
  0xcf   :  { %v809_v47 = vadd.f32 %v808_v44, %v795_v41  ;;  %v822_v48 = vpop.f32.mrf.mxu1  ;;  %vm125_vm0 = vcmp.ne.f32.partialorder %v123_v53, 0.0 }
  0xd0   :  { %v1016_v3 = vsel %vm125_vm0, 1.0, %v1653_v30 }
  0xd1   :  { %v823_v55 = vadd.f32 %v822_v48, %v809_v47 }
  0xd2   :  { %v120_v57 = vpop.xlane.xlu0 %119 }
  0xd3   :  { %v122_v61 = vpack.c.bf16 %v120_v57, %v120_v57  ;;  %v911_v63 = vmax.f32 %v823_v55, 0.0 }
  0xd5   :  { %v124_v1 = vunpack.c.l.bf16 %v122_v61  ;;  %v915_v9 = vmul.f32 %v1016_v3, %v911_v63 }
  0xd6   :  { %v810_v62 = vpop.f32.mrf.mxu0  ;;  %v836_v15 = vpop.f32.mrf.mxu2 }
  0xd7   :  { %v811_v0 = vadd.f32 %v810_v62, %v797_v56  ;;  %v824_v2 = vpop.f32.mrf.mxu1  ;;  %vm126_vm4 = vcmp.ne.f32.partialorder %v124_v1, 0.0  ;;  %v850_v16 = vpop.f32.mrf.mxu3  ;;  %v837_v18 = vadd.f32 %v836_v15, %v230_v17 }
  0xd8   :  { %v1017_v7 = vsel %vm126_vm4, 1.0, %v1653_v30  ;;  %vm1429_vm5 = vmpackc.low %vm126_vm4, %vm125_vm0 }
  0xd9   :  { %v825_v6 = vadd.f32 %v824_v2, %v811_v0  ;;  %1430 = vmatpush.bf16.msk.msrb.mxu2 %vm1429_vm5, %v1654_v12  ;;  %v851_v22 = vadd.f32 %v850_v16, %v837_v18 }
  0xdb   :  { %v913_v10 = vmax.f32 %v825_v6, 0.0 }
  0xdc   :  { %1431 = vmatmul.msk.bf16.vlgmr.msrb.gmra.mxu2 %vm936_vm6, %v932_v8 }
  0xdd   :  { %v917_v13 = vmul.f32 %v1017_v7, %v913_v10 }
  0xde   :  { %v838_v19 = vpop.f32.mrf.mxu2 }
  0xdf   :  { %v934_v14 = vpack.c.bf16 %v917_v13, %v915_v9  ;;  %v852_v20 = vpop.f32.mrf.mxu3  ;;  %v839_v24 = vadd.f32 %v838_v19, %v230_v17 }
  0xe1   :  { %947 = vmatpush.bf16.msrb.mxu0 %v934_v14  ;;  %v853_v27 = vadd.f32 %v852_v20, %v839_v24 }
  0xe4   :  { %1427 = vmatmul.msk.bf16.vlgmr.msrb.gmra.mxu0 %vm936_vm6, %v932_v8 }
  0xee   :  { %v864_v21 = vpop.f32.mrf.mxu0 }
  0xef   :  { %v878_v58 = vpop.f32.mrf.mxu1  ;;  %v865_v25 = vadd.f32 %v864_v21, %v851_v22 }
  0xf1   :  { %v879_v28 = vadd.f32 %v878_v58, %v865_v25 }
  0xf6   :  { %v892_v26 = vpop.f32.mrf.mxu2  ;;  %v866_v5 = vpop.f32.mrf.mxu0 }
  0xf7   :  { %v906_v29 = vpop.f32.mrf.mxu3  ;;  %v893_v32 = vadd.f32 %v892_v26, %v879_v28  ;;  %v867_v33 = vadd.f32 %v866_v5, %v853_v27  ;;  %v880_v34 = vpop.f32.mrf.mxu1 }
  0xf9   :  { %v907_v35 = vadd.f32 %v906_v29, %v893_v32  ;;  %v881_v36 = vadd.f32 %v880_v34, %v867_v33 }
  0xfb   :  { %v912_v11 = vmax.f32 %v907_v35, 0.0 }
  0xfd   :  { %v916_v40 = vmul.f32 %v1016_v3, %v912_v11 }
  0xfe   :  { %v894_v37 = vpop.f32.mrf.mxu2 }
  0xff   :  { %v895_v31 = vadd.f32 %v894_v37, %v881_v36  ;;  %v908_v38 = vpop.f32.mrf.mxu3 }
 0x101   :  { %v909_v39 = vadd.f32 %v908_v38, %v895_v31 }
 0x103   :  { %v914_v23 = vmax.f32 %v909_v39, 0.0 }
 0x105   :  { %v918_v45 = vmul.f32 %v1017_v7, %v914_v23 }
 0x107   :  { %v935_v41 = vpack.c.bf16 %v918_v45, %v916_v40 }
 0x109   :  { %960 = vmatpush.bf16.msrb.mxu1 %v935_v41 }
 0x10c   :  { %1428 = vmatmul.msk.bf16.vlgmr.msrb.gmra.mxu1 %vm936_vm6, %v932_v8 }
 0x15f   :  { %v985_v42 = vpop.f32.mrf.mxu2 }
 0x160   :  { %v989_v44 = vadd.f32 %v985_v42, %v974_v43 }
 0x161   :  { %v949_v49 = vpop.f32.mrf.mxu0 }
 0x162   :  { %991 = vst.msk [vmem:[%s1744_s4] sm:$0x3] %vm79_vm7, %v989_v44 }
 0x167   :  { %v987_v47 = vpop.f32.mrf.mxu2 }
 0x169   :  { %v951_v46 = vpop.f32.mrf.mxu0 }
 0x189   :  { %v962_v48 = vpop.f32.mrf.mxu1 }
 0x18a   :  { %v968_v51 = vrot.slane %v962_v48, 6 }
 0x18c   :  { %v970_v30 = vsel %vm969_vm8, %v949_v49, %v968_v51 }
 0x18d   :  { %v972_v52 = vadd.f32 %v970_v30, %v933_v50 }
 0x18f   :  { %973 = vst [vmem:[#allocation8] sm:$0xf] %v972_v52 }
 0x190   :  { %1002 = dma.vmem_to_hbm [thread:$0]  %s998_s12, 64, %s1000_s15, [#allocation4]  }
 0x191   :  { %v964_v53 = vpop.f32.mrf.mxu1 }
 0x192   :  { %1644 = dma.done.wait [#allocation4], 64  }
 0x193   :  { %1645 = vsyncadd [#allocation4], 4294967232 }
 0x194   :  { %1011 = vsyncpa [#allocation3], 1 }
 0x195   :  { %1012 = vsyncpa [#allocation6], 1 }
 0x196   :  { %1013 = vsyncpa [#allocation4], 1 }

</bundles_post_ra>
